<compile_context>
chip_gen: v7x
topology: tpu7x:2x2x1
jax: 0.10.0
libtpu: 0.0.40
codegen_flags: <defaults>
</compile_context>

<pallas_src>
import functools
import numpy as np

import jax
import jax.numpy as jnp
from jax.experimental import pallas as pl
from jax.experimental.pallas import tpu as pltpu


def _modconv_kernel(style_ref, dmod_ref, x_ref, w_ref, mask_ref, o_ref, col_ref,
                    *, H, W, K, padding, C_in):
    """One grid step == (batch b, out-channel tile co).

    style_ref : (1, C_in, 1)             modulated style row for batch b
    dmod_ref  : (1, tile_co, 1)          demodulation factors for batch b / tile co
    x_ref     : (1, C_in, H*W)           flat (lane-dense) input for batch b
    w_ref     : (tile_co, C_in*K*K)      shared, pre-scaled, tap-major flat weight tile
    mask_ref  : (K*K, H*W)               per-tap border masks (shared constants)
    o_ref     : (1, tile_co, H*W)        flat output for batch b / tile co
    col_ref   : (C_in*K*K, H*W) VMEM     im2col scratch (built once per batch)
    """
    HW = H * W
    co = pl.program_id(1)

    # --- build the im2col RHS once per batch; it is reused by every C_out tile ---
    @pl.when(co == 0)
    def _build_cols():
        # modulation moved onto the activations: per-batch input-channel scaling
        xs = (x_ref[0] * style_ref[0]).astype(jnp.float32)         # (C_in, HW)
        masks = mask_ref[...]                                      # (K*K, HW)
        for ky in range(K):
            for kx in range(K):
                t = ky * K + kx
                k = (ky - padding) * W + (kx - padding)            # flat tap offset
                if k == 0:
                    shifted = xs
                else:
                    # shifted[p] = xs[(p + k) mod HW]; wrapped lanes masked to zero
                    shifted = pltpu.roll(xs, shift=(-k) % HW, axis=1)
                if ky == padding and kx == padding:
                    tap = shifted                                  # centre tap: mask == 1
                else:
                    tap = shifted * masks[t:t + 1, :]
                col_ref[t * C_in:(t + 1) * C_in, :] = tap.astype(col_ref.dtype)

    # --- single MXU matmul over the folded (C_in*K*K) contraction dim ---
    acc = jnp.dot(w_ref[...], col_ref[...],
                  preferred_element_type=jnp.float32)              # (tile_co, HW)

    # --- demodulation as a per-(batch, out-channel) output scaling ---
    o_ref[0] = (acc * dmod_ref[0].astype(jnp.float32)).astype(o_ref.dtype)


def modulated_conv2d(x, style, weight, mod_w, mod_b, *, kernel=3, padding=1,
                     demod=True, compute_dtype=None):
    """Fused ModulatedConv2d forward (stride=1, no upsample)."""
    B, C_in, H, W = x.shape
    C_out = weight.shape[0]
    style_dim = mod_w.shape[1]
    HW = H * W
    KK = kernel * kernel
    if compute_dtype is None:
        # Pass compute_dtype=jnp.bfloat16 on v6e/v7x for ~2x MXU throughput
        # (accumulation stays f32); tolerance vs f32 must then be loosened.
        compute_dtype = x.dtype

    # output-channel tile: bound per-step VMEM (weight/output blocks) for large C_out
    if C_out > 128 and C_out % 128 == 0:
        tile_co = 128
    else:
        tile_co = C_out
    n_co = C_out // tile_co

    # equalized-LR conv scale: 1 / sqrt(fan_in + 1e-8)
    scale = float(1.0 / np.sqrt(C_in * kernel * kernel + 1e-8))

    # EqualizedLinear mod_style (tiny glue matmul): style @ (W/sqrt(fan_in)).T + bias
    lin_scale = 1.0 / np.sqrt(style_dim)
    s_mod = (style @ (mod_w * lin_scale).T + mod_b).astype(jnp.float32)   # (B, C_in)

    # demod factors d[b,o] = rsqrt( sum_{i,kh,kw} (scale*W[o,i,kh,kw]*s[b,i])^2 + 1e-8 )
    # computed on tiny tensors in the wrapper so the weight stays shared in-kernel.
    w_scaled = (scale * weight).astype(jnp.float32)                        # (O, I, K, K)
    if demod:
        w_sq = jnp.sum(w_scaled * w_scaled, axis=(2, 3))                   # (O, I)
        dmod = jax.lax.rsqrt((s_mod * s_mod) @ w_sq.T + 1e-8)              # (B, O)
    else:
        dmod = jnp.ones((B, C_out), jnp.float32)

    # flattened, tap-major weight shared by every grid step: (C_out, K*K*C_in)
    w_flat = jnp.transpose(w_scaled, (0, 2, 3, 1)).reshape(C_out, KK * C_in)
    w_flat = w_flat.astype(compute_dtype)

    # lane-dense flat activations; no jnp.pad (borders handled by in-kernel masks)
    x_flat = x.reshape(B, C_in, HW)

    # per-tap border masks (numpy constants): mask[t, p] = 1 iff tap t reads in-bounds
    hh, ww = np.divmod(np.arange(HW), W)
    masks_np = np.zeros((KK, HW), np.float32)
    for ky in range(kernel):
        for kx in range(kernel):
            dy, dx = ky - padding, kx - padding
            valid = (hh + dy >= 0) & (hh + dy < H) & (ww + dx >= 0) & (ww + dx < W)
            masks_np[ky * kernel + kx] = valid
    masks = jnp.asarray(masks_np)

    kernel_fn = functools.partial(_modconv_kernel, H=H, W=W, K=kernel,
                                  padding=padding, C_in=C_in)

    out_flat = pl.pallas_call(
        kernel_fn,
        out_shape=jax.ShapeDtypeStruct((B, C_out, HW), x.dtype),
        grid=(B, n_co),
        in_specs=[
            pl.BlockSpec((1, C_in, 1), lambda b, co: (b, 0, 0)),        # style row (batch b)
            pl.BlockSpec((1, tile_co, 1), lambda b, co: (b, co, 0)),    # demod tile
            pl.BlockSpec((1, C_in, HW), lambda b, co: (b, 0, 0)),       # flat input (batch b)
            pl.BlockSpec((tile_co, KK * C_in), lambda b, co: (co, 0)),  # flat weight tile
            pl.BlockSpec((KK, HW), lambda b, co: (0, 0)),               # shared border masks
        ],
        out_specs=pl.BlockSpec((1, tile_co, HW), lambda b, co: (b, co, 0)),
        scratch_shapes=[pltpu.VMEM((KK * C_in, HW), compute_dtype)],
        compiler_params=pltpu.CompilerParams(
            dimension_semantics=("parallel", "arbitrary")),
    )(s_mod.reshape(B, C_in, 1), dmod.reshape(B, C_out, 1), x_flat, w_flat, masks)

    return out_flat.reshape(B, C_out, H, W)


def _reference(x, style, weight, mod_w, mod_b, *, kernel=3, padding=1, demod=True):
    """Pure-JAX reference mirroring the PyTorch fused path."""
    B, C_in, H, W = x.shape
    style_dim = mod_w.shape[1]
    scale = 1.0 / np.sqrt(C_in * kernel * kernel + 1e-8)
    s_mod = style @ (mod_w * (1.0 / np.sqrt(style_dim))).T + mod_b    # (B, C_in)

    w = scale * weight[None] * s_mod[:, None, :, None, None]          # (B,O,I,K,K)
    if demod:
        d = jax.lax.rsqrt(jnp.sum(w * w, axis=(2, 3, 4), keepdims=True) + 1e-8)
        w = w * d

    outs = []
    for b in range(B):
        outs.append(jax.lax.conv_general_dilated(
            x[b:b + 1], w[b], window_strides=(1, 1),
            padding=((padding, padding), (padding, padding)),
            dimension_numbers=('NCHW', 'OIHW', 'NCHW')))
    return jnp.concatenate(outs, axis=0)


if __name__ == "__main__":
    # module config (small, consistent with ModulatedConv2d defaults)
    B, C_in, C_out, H, W = 2, 4, 8, 16, 16
    style_dim, K, pad = 32, 3, 1

    key = jax.random.PRNGKey(0)
    kx, ks, kw, km = jax.random.split(key, 4)

    x      = jax.random.normal(kx, (B, C_in, H, W), dtype=jnp.float32)
    style  = jax.random.normal(ks, (B, style_dim), dtype=jnp.float32)
    # nn.Parameter(torch.randn(out_channel, in_channel, kernel, kernel))
    weight = jax.random.normal(kw, (C_out, C_in, K, K), dtype=jnp.float32)
    # EqualizedLinear(style_dim, in_channel, bias_init=1.0)
    mod_w  = jax.random.normal(km, (C_in, style_dim), dtype=jnp.float32)
    mod_b  = jnp.full((C_in,), 1.0, dtype=jnp.float32)

    out = modulated_conv2d(x, style, weight, mod_w, mod_b,
                           kernel=K, padding=pad, demod=True)
    out = jax.block_until_ready(out)

    ref = jax.block_until_ready(
        _reference(x, style, weight, mod_w, mod_b, kernel=K, padding=pad, demod=True))

    assert out.shape == (B, C_out, H, W)
    np.testing.assert_allclose(np.asarray(out), np.asarray(ref), rtol=5e-4, atol=5e-4)

    print("KERNEL_OK")
</pallas_src>

<mosaic_0001>
module attributes {stable_mosaic.version = 11 : i64} {
  func.func @_modconv_kernel(%arg0: i32, %arg1: i32, %arg2: memref<1x4x1xf32, #tpu.memory_space<vmem>>, %arg3: memref<1x8x1xf32, #tpu.memory_space<vmem>>, %arg4: memref<1x4x256xf32, #tpu.memory_space<vmem>>, %arg5: memref<8x36xf32, #tpu.memory_space<vmem>>, %arg6: memref<9x256xf32, #tpu.memory_space<vmem>>, %arg7: memref<1x8x256xf32, #tpu.memory_space<vmem>>, %arg8: memref<36x256xf32, #tpu.memory_space<vmem>>) attributes {dimension_semantics = [#tpu.dimension_semantics<parallel>, #tpu.dimension_semantics<arbitrary>], iteration_bounds = array<i64: 2, 1>, scalar_prefetch = 0 : i64, scratch_operands = 1 : i64, tpu.core_type = #tpu.core_type<tc>, window_params = [{transform_indices = @transform_0, window_bounds = array<i64: 1, 4, 1>}, {transform_indices = @transform_1, window_bounds = array<i64: 1, 8, 1>}, {transform_indices = @transform_2, window_bounds = array<i64: 1, 4, 256>}, {transform_indices = @transform_3, window_bounds = array<i64: 8, 36>}, {pipeline_mode = #tpu.pipeline_mode<synchronous>, transform_indices = @transform_4, window_bounds = array<i64: 9, 256>}, {transform_indices = @transform_5, window_bounds = array<i64: 1, 8, 256>}]} {
    %c0_i32 = arith.constant 0 : i32
    %0 = arith.cmpi eq, %arg1, %c0_i32 : i32
    %1 = arith.extui %0 : i1 to i32
    %c0_i32_0 = arith.constant 0 : i32
    %2 = arith.cmpi ne, %1, %c0_i32_0 : i32
    scf.if %2 {
      %c0_10 = arith.constant 0 : index
      %c0_11 = arith.constant 0 : index
      %c0_12 = arith.constant 0 : index
      %13 = vector.load %arg4[%c0_10, %c0_11, %c0_12] : memref<1x4x256xf32, #tpu.memory_space<vmem>>, vector<1x4x256xf32>
      %14 = vector.shape_cast %13 : vector<1x4x256xf32> to vector<4x256xf32>
      %c0_13 = arith.constant 0 : index
      %c0_14 = arith.constant 0 : index
      %c0_15 = arith.constant 0 : index
      %15 = vector.load %arg2[%c0_13, %c0_14, %c0_15] : memref<1x4x1xf32, #tpu.memory_space<vmem>>, vector<1x4x1xf32>
      %16 = vector.shape_cast %15 : vector<1x4x1xf32> to vector<4x1xf32>
      %17 = vector.broadcast %16 : vector<4x1xf32> to vector<4x256xf32>
      %18 = arith.mulf %14, %17 : vector<4x256xf32>
      %c0_16 = arith.constant 0 : index
      %c0_17 = arith.constant 0 : index
      %19 = vector.load %arg6[%c0_16, %c0_17] : memref<9x256xf32, #tpu.memory_space<vmem>>, vector<9x256xf32>
      %c17_i32 = arith.constant 17 : i32
      %20 = tpu.dynamic_rotate %18 by %c17_i32 dim 1 : vector<4x256xf32>, i32 -> vector<4x256xf32>
      %21 = vector.extract_strided_slice %19 {offsets = [0, 0], sizes = [1, 256], strides = [1, 1]} : vector<9x256xf32> to vector<1x256xf32>
      %22 = vector.broadcast %21 : vector<1x256xf32> to vector<4x256xf32>
      %23 = arith.mulf %20, %22 : vector<4x256xf32>
      %c0_18 = arith.constant 0 : index
      %c0_19 = arith.constant 0 : index
      %24 = vector.load %arg8[%c0_18, %c0_19] : memref<36x256xf32, #tpu.memory_space<vmem>>, vector<4x256xf32>
      tpu.vector_store %arg8[%c0_18, %c0_19], %23 {strides = array<i32>} : memref<36x256xf32, #tpu.memory_space<vmem>>, vector<4x256xf32>,
      %c16_i32 = arith.constant 16 : i32
      %25 = tpu.dynamic_rotate %18 by %c16_i32 dim 1 : vector<4x256xf32>, i32 -> vector<4x256xf32>
      %26 = vector.extract_strided_slice %19 {offsets = [1, 0], sizes = [1, 256], strides = [1, 1]} : vector<9x256xf32> to vector<1x256xf32>
      %27 = vector.broadcast %26 : vector<1x256xf32> to vector<4x256xf32>
      %28 = arith.mulf %25, %27 : vector<4x256xf32>
      %c4 = arith.constant 4 : index
      %c0_20 = arith.constant 0 : index
      %29 = vector.load %arg8[%c4, %c0_20] : memref<36x256xf32, #tpu.memory_space<vmem>>, vector<4x256xf32>
      tpu.vector_store %arg8[%c4, %c0_20], %28 {strides = array<i32>} : memref<36x256xf32, #tpu.memory_space<vmem>>, vector<4x256xf32>,
      %c15_i32 = arith.constant 15 : i32
      %30 = tpu.dynamic_rotate %18 by %c15_i32 dim 1 : vector<4x256xf32>, i32 -> vector<4x256xf32>
      %31 = vector.extract_strided_slice %19 {offsets = [2, 0], sizes = [1, 256], strides = [1, 1]} : vector<9x256xf32> to vector<1x256xf32>
      %32 = vector.broadcast %31 : vector<1x256xf32> to vector<4x256xf32>
      %33 = arith.mulf %30, %32 : vector<4x256xf32>
      %c8 = arith.constant 8 : index
      %c0_21 = arith.constant 0 : index
      %34 = vector.load %arg8[%c8, %c0_21] : memref<36x256xf32, #tpu.memory_space<vmem>>, vector<4x256xf32>
      tpu.vector_store %arg8[%c8, %c0_21], %33 {strides = array<i32>} : memref<36x256xf32, #tpu.memory_space<vmem>>, vector<4x256xf32>,
      %c1_i32 = arith.constant 1 : i32
      %35 = tpu.dynamic_rotate %18 by %c1_i32 dim 1 : vector<4x256xf32>, i32 -> vector<4x256xf32>
      %36 = vector.extract_strided_slice %19 {offsets = [3, 0], sizes = [1, 256], strides = [1, 1]} : vector<9x256xf32> to vector<1x256xf32>
      %37 = vector.broadcast %36 : vector<1x256xf32> to vector<4x256xf32>
      %38 = arith.mulf %35, %37 : vector<4x256xf32>
      %c12 = arith.constant 12 : index
      %c0_22 = arith.constant 0 : index
      %39 = vector.load %arg8[%c12, %c0_22] : memref<36x256xf32, #tpu.memory_space<vmem>>, vector<4x256xf32>
      tpu.vector_store %arg8[%c12, %c0_22], %38 {strides = array<i32>} : memref<36x256xf32, #tpu.memory_space<vmem>>, vector<4x256xf32>,
      %c16 = arith.constant 16 : index
      %c0_23 = arith.constant 0 : index
      %40 = vector.load %arg8[%c16, %c0_23] : memref<36x256xf32, #tpu.memory_space<vmem>>, vector<4x256xf32>
      tpu.vector_store %arg8[%c16, %c0_23], %18 {strides = array<i32>} : memref<36x256xf32, #tpu.memory_space<vmem>>, vector<4x256xf32>,
      %c255_i32 = arith.constant 255 : i32
      %41 = tpu.dynamic_rotate %18 by %c255_i32 dim 1 : vector<4x256xf32>, i32 -> vector<4x256xf32>
      %42 = vector.extract_strided_slice %19 {offsets = [5, 0], sizes = [1, 256], strides = [1, 1]} : vector<9x256xf32> to vector<1x256xf32>
      %43 = vector.broadcast %42 : vector<1x256xf32> to vector<4x256xf32>
      %44 = arith.mulf %41, %43 : vector<4x256xf32>
      %c20 = arith.constant 20 : index
      %c0_24 = arith.constant 0 : index
      %45 = vector.load %arg8[%c20, %c0_24] : memref<36x256xf32, #tpu.memory_space<vmem>>, vector<4x256xf32>
      tpu.vector_store %arg8[%c20, %c0_24], %44 {strides = array<i32>} : memref<36x256xf32, #tpu.memory_space<vmem>>, vector<4x256xf32>,
      %c241_i32 = arith.constant 241 : i32
      %46 = tpu.dynamic_rotate %18 by %c241_i32 dim 1 : vector<4x256xf32>, i32 -> vector<4x256xf32>
      %47 = vector.extract_strided_slice %19 {offsets = [6, 0], sizes = [1, 256], strides = [1, 1]} : vector<9x256xf32> to vector<1x256xf32>
      %48 = vector.broadcast %47 : vector<1x256xf32> to vector<4x256xf32>
      %49 = arith.mulf %46, %48 : vector<4x256xf32>
      %c24 = arith.constant 24 : index
      %c0_25 = arith.constant 0 : index
      %50 = vector.load %arg8[%c24, %c0_25] : memref<36x256xf32, #tpu.memory_space<vmem>>, vector<4x256xf32>
      tpu.vector_store %arg8[%c24, %c0_25], %49 {strides = array<i32>} : memref<36x256xf32, #tpu.memory_space<vmem>>, vector<4x256xf32>,
      %c240_i32 = arith.constant 240 : i32
      %51 = tpu.dynamic_rotate %18 by %c240_i32 dim 1 : vector<4x256xf32>, i32 -> vector<4x256xf32>
      %52 = vector.extract_strided_slice %19 {offsets = [7, 0], sizes = [1, 256], strides = [1, 1]} : vector<9x256xf32> to vector<1x256xf32>
      %53 = vector.broadcast %52 : vector<1x256xf32> to vector<4x256xf32>
      %54 = arith.mulf %51, %53 : vector<4x256xf32>
      %c28 = arith.constant 28 : index
      %c0_26 = arith.constant 0 : index
      %55 = vector.load %arg8[%c28, %c0_26] : memref<36x256xf32, #tpu.memory_space<vmem>>, vector<4x256xf32>
      tpu.vector_store %arg8[%c28, %c0_26], %54 {strides = array<i32>} : memref<36x256xf32, #tpu.memory_space<vmem>>, vector<4x256xf32>,
      %c239_i32 = arith.constant 239 : i32
      %56 = tpu.dynamic_rotate %18 by %c239_i32 dim 1 : vector<4x256xf32>, i32 -> vector<4x256xf32>
      %57 = vector.extract_strided_slice %19 {offsets = [8, 0], sizes = [1, 256], strides = [1, 1]} : vector<9x256xf32> to vector<1x256xf32>
      %58 = vector.broadcast %57 : vector<1x256xf32> to vector<4x256xf32>
      %59 = arith.mulf %56, %58 : vector<4x256xf32>
      %c32 = arith.constant 32 : index
      %c0_27 = arith.constant 0 : index
      %60 = vector.load %arg8[%c32, %c0_27] : memref<36x256xf32, #tpu.memory_space<vmem>>, vector<4x256xf32>
      tpu.vector_store %arg8[%c32, %c0_27], %59 {strides = array<i32>} : memref<36x256xf32, #tpu.memory_space<vmem>>, vector<4x256xf32>,
    } else {
    }
    %c0 = arith.constant 0 : index
    %c0_1 = arith.constant 0 : index
    %3 = vector.load %arg5[%c0, %c0_1] : memref<8x36xf32, #tpu.memory_space<vmem>>, vector<8x36xf32>
    %c0_2 = arith.constant 0 : index
    %c0_3 = arith.constant 0 : index
    %4 = vector.load %arg8[%c0_2, %c0_3] : memref<36x256xf32, #tpu.memory_space<vmem>>, vector<36x256xf32>
    %cst = arith.constant dense<0.000000e+00> : vector<8x256xf32>
    %5 = tpu.matmul %3, %4, %cst {dimension_numbers = #tpu.dot_dimension_numbers<[1], [0], [0], [1], [0, 0, 1, 1], [], []>} : vector<8x36xf32>, vector<36x256xf32>, vector<8x256xf32> -> vector<8x256xf32>
    %c0_4 = arith.constant 0 : index
    %c0_5 = arith.constant 0 : index
    %c0_6 = arith.constant 0 : index
    %6 = vector.load %arg3[%c0_4, %c0_5, %c0_6] : memref<1x8x1xf32, #tpu.memory_space<vmem>>, vector<1x8x1xf32>
    %7 = vector.shape_cast %6 : vector<1x8x1xf32> to vector<8x1xf32>
    %8 = vector.broadcast %7 : vector<8x1xf32> to vector<8x256xf32>
    %9 = arith.mulf %5, %8 : vector<8x256xf32>
    %c0_7 = arith.constant 0 : index
    %c0_8 = arith.constant 0 : index
    %c0_9 = arith.constant 0 : index
    %10 = vector.load %arg7[%c0_7, %c0_8, %c0_9] : memref<1x8x256xf32, #tpu.memory_space<vmem>>, vector<1x8x256xf32>
    %11 = vector.shape_cast %10 : vector<1x8x256xf32> to vector<8x256xf32>
    %12 = vector.shape_cast %9 : vector<8x256xf32> to vector<1x8x256xf32>
    tpu.vector_store %arg7[%c0_7, %c0_8, %c0_9], %12 {strides = array<i32>} : memref<1x8x256xf32, #tpu.memory_space<vmem>>, vector<1x8x256xf32>,
    return
  }
  func.func @transform_0(%arg0: i32, %arg1: i32) -> (i32, i32, i32) {
    %c0_i32 = arith.constant 0 : i32
    %c0_i32_0 = arith.constant 0 : i32
    %c0_i32_1 = arith.constant 0 : i32
    return %arg0, %c0_i32, %c0_i32_0 : i32, i32, i32
  }
  func.func @transform_1(%arg0: i32, %arg1: i32) -> (i32, i32, i32) {
    %c0_i32 = arith.constant 0 : i32
    %c0_i32_0 = arith.constant 0 : i32
    return %arg0, %arg1, %c0_i32 : i32, i32, i32
  }
  func.func @transform_2(%arg0: i32, %arg1: i32) -> (i32, i32, i32) {
    %c0_i32 = arith.constant 0 : i32
    %c0_i32_0 = arith.constant 0 : i32
    %c0_i32_1 = arith.constant 0 : i32
    return %arg0, %c0_i32, %c0_i32_0 : i32, i32, i32
  }
  func.func @transform_3(%arg0: i32, %arg1: i32) -> (i32, i32) {
    %c0_i32 = arith.constant 0 : i32
    %c0_i32_0 = arith.constant 0 : i32
    return %arg1, %c0_i32 : i32, i32
  }
  func.func @transform_4(%arg0: i32, %arg1: i32) -> (i32, i32) {
    %c0_i32 = arith.constant 0 : i32
    %c0_i32_0 = arith.constant 0 : i32
    %c0_i32_1 = arith.constant 0 : i32
    return %c0_i32, %c0_i32_0 : i32, i32
  }
  func.func @transform_5(%arg0: i32, %arg1: i32) -> (i32, i32, i32) {
    %c0_i32 = arith.constant 0 : i32
    %c0_i32_0 = arith.constant 0 : i32
    return %arg0, %arg1, %c0_i32 : i32, i32, i32
  }
}

</mosaic_0001>

<bundles_post_ra>
// kernel: tpu_custom_call.1
= control target key start
LH: loop header
LB: loop body
LE: loop exit
PB: predicated region body
PF: predicated region fallthrough
CT: control target
= control target key end

     0   :  { %10 = vsyncpa [#allocation4], 0  ;;  %s1285_s0 = inlined_call_operand.vmem [shape: f32[2,4,1], index: 0, kind: input, shape index: {}]   ;;  %s1286_s1 = inlined_call_operand.vmem [shape: f32[2,8,1], index: 1, kind: input, shape index: {}]   ;;  %s1287_s2 = inlined_call_operand.hbm [shape: f32[2,4,256], index: 2, kind: input, shape index: {}]   ;;  %s1288_s3 = inlined_call_operand.vmem [shape: f32[8,36], index: 3, kind: input, shape index: {}]   ;;  %s1289_s4 = inlined_call_operand.vmem [shape: f32[9,256], index: 4, kind: input, shape index: {}]   ;;  %s1290_s5 = inlined_call_operand.hbm [shape: f32[2,8,256], index: 5, kind: output, shape index: {}]  }
   0x1   :  { %12 = vsyncpa [#allocation4 + $0x1], 0 }
   0x2   :  { %13 = vsyncpa [#allocation5], 0 }
   0x3   :  { %15 = vsyncpa [#allocation5 + $0x1], 0  ;;  %s1031_s18 = smov 0   ;;  %s1033_s19 = smov 0  }
   0x4   :  { %s1035_s20 = smov 0   ;;  %s1037_s21 = smov 0  }
   0x5   :  { %s1039_s22 = smov 0   ;;  %s1041_s23 = smov 0  }
   0x6 LB: > { %s766_s24 = sadd.s32 4294967295, %s986_s23   ;;  %s767_s25 = sadd.s32 4294967294, %s986_s23   ;;  %s986_s23 = sphi %s1041_s23, %s21_s23   ;;  %s982_s22 = sphi %s1039_s22, %s1306_s22   ;;  %s978_s21 = sphi %s1037_s21, %s1305_s21   ;;  %s974_s20 = sphi %s1035_s20, %s1304_s20   ;;  %s970_s19 = sphi %s1033_s19, %s1303_s19   ;;  %s966_s18 = sphi %s1031_s18, %s1302_s18  }
   0x7   : > { %s33_s26 = sadd.s32 1, %s982_s22  ;;  %s94_s27 = sadd.s32 1, %s974_s20 }
   0x8   : > { %p35_p0 = scmp.ge.s32.totalorder %s33_s26, 2  ;;  %p101_p1 = scmp.ne.s32.totalorder %s974_s20, %s970_s19 }
   0x9   : > { %p102_p2 = scmp.eq.s32.totalorder %s986_s23, 0  ;;  %p107_p3 = scmp.ne.s32.totalorder %s970_s19, %s966_s18 }
   0xa   : > { %s1308_s26 = smov (%p35_p0, %s33_s26), 0  ;;  %p108_p5 = scmp.eq.s32.totalorder %s766_s24, 0 }
   0xb   : > { %p1072_p4 = por %p102_p2, %p101_p1  ;;  %s91_s29 = ssub.s32 %s982_s22, %s1308_s26 }
   0xc   : > { %p180_p6 = scmp.eq.s32.totalorder %s766_s24, 1  ;;  %p92_p7 = scmp.eq.s32.totalorder %s91_s29, 0 }
   0xd   : > { %p1078_p8 = por %p108_p5, %p107_p3  ;;  %p186_p10 = scmp.eq.s32.totalorder %s767_s25, 1 }
   0xe   : > { %p1082_p9 = por %p180_p6, %p101_p1  ;;  %p811_p13 = scmp.lt.s32.totalorder %s986_s23, 2 }
   0xf   : > { %s1087_s7 = scalar_select %p92_p7, %s974_s20, %s94_s27  }
  0x10   : > { %s1294_s6 = scalar_select %p1082_p9, 1, 0 }
  0x11   : > { %p1089_p11 = por %p186_p10, %p107_p3  ;;  %s233_s9 = sand.u32 1, %s974_s20  }
  0x12   : > { %s771_s10 = sshll.u32 %s233_s9, 3  ;;  %s789_s11 = sshll.u32 %s982_s22, 7 }
  0x13   : > { %s1295_s8 = scalar_select %p1089_p11, 1, 0 }
  0x14   : > { %s1100_s14 = scalar_lea.hbm %s1287_s2, %s789_s11  ;;  %s237_s15 = scalar_lea.vmem [#allocation3], %s771_s10 }
  0x15   : > { %s245_s16 = sshll.u32 %s237_s15, 4  ;;  %p1106_p0 = pnand %p811_p13, %p1072_p4  ;;  %s1102_s16 = int_to_ptr.vmem [resolvable:$true] %s245_s16 }
  0x16   : > { %s234_s24 = scalar_lea.sflag [#allocation4], %s233_s9  ;;  %s874_s25 = scalar_lea.hbm %s1100_s14, 128 }
  0x17   : > { %p875_p3 = scmp.ne.s32.totalorder %s1100_s14, %s874_s25  ;;  %p876_p5 = pneg %p1106_p0 }
  0x18   : > { %s879_s28 = scalar_lea.hbm %s1287_s2, 256  ;;  %p880_p4 = scmp.lt.u32.totalorder %s1100_s14, %s1287_s2 }
  0x19   : > { %p877_p6 = pnand %p876_p5, %p875_p3  ;;  %p881_p10 = scmp.lt.u32.totalorder %s879_s28, %s874_s25 }
  0x1a   : > { %p883_p12 = scmp.lt.u32.totalorder %s874_s25, %s1100_s14 }
  0x1b   : > { %p878_p7 = pneg %p877_p6  ;;  %p882_p13 = por %p881_p10, %p880_p4 }
  0x1d   : > { %p884_p1 = por %p883_p12, %p882_p13 }
  0x1f   : > { %p885_p2 = pnand %p884_p1, %p878_p7 }
  0x21   : > { %888 = shalt.err (!%p885_p2)
}
  0x22   : > { %s889_s9 = scalar_lea.vmem %s1102_s16, 128  ;;  %s988_s12 = smov [#allocation3]  }
  0x23   : > { %p890_p3 = scmp.ne.s32.totalorder %s1102_s16, %s889_s9  ;;  %s894_s13 = sshll.u32 %s988_s12, 4  ;;  %s895_s13 = int_to_ptr.vmem [resolvable:$false] %s894_s13 }
  0x24   : > { %s896_s15 = scalar_lea.vmem %s895_s13, 256  ;;  %p897_p9 = scmp.lt.s32.totalorder %s1102_s16, %s895_s13 }
  0x25   : > { %p892_p6 = pnand %p890_p3, %p876_p5  ;;  %p898_p4 = scmp.lt.s32.totalorder %s896_s15, %s889_s9 }
  0x27   : > { %p893_p11 = pneg %p892_p6  ;;  %p899_p10 = por %p898_p4, %p897_p9 }
  0x29   : > { %p900_p12 = pnand %p899_p10, %p893_p11 }
  0x2b   : > { %903 = shalt.err (!%p900_p12)
}
  0x2c   : > { %806 = dma.hbm_to_vmem [thread:$0]  (!%p1106_p0), %s1100_s14, 128, %s1102_s16, %s234_s24  }
  0x2d   : > { %p1297_p1 = scmp.lt.s32.totalorder %s986_s23, 3  ;;  %p1298_p2 = scmp.ge.s32.totalorder %s986_s23, 1 }
  0x2f   : > { %p251_p5 = pnand %p1298_p2, %p1297_p1 }
  0x30   : > { %s1142_s25 = sand.u32 (!%p251_p5), 1, %s970_s19  }
  0x31   : > { %254 = sbr.rel (%p251_p5) target bundleno = 583 (0x247), region = 40  ;;  %s775_s27 = sshll.u32 (!%p251_p5), %s1142_s25, 3 }
  0x32   : > { %s257_s29 = scalar_lea.sflag (!%p251_p5), [#allocation4], %s1142_s25  ;;  %s260_s28 = scalar_lea.vmem (!%p251_p5), [#allocation3], %s775_s27 }
  0x38   : > { %957 = dma.done.wait (%p1078_p8), %s257_s29, 128  }
  0x39   : > { %959 = vsyncadd (%p1078_p8), %s257_s29, 4294967168  ;;  %p302_p9 = scmp.lt.s32.totalorder %s978_s21, 1  ;;  %v989_v0 = vmov 0   ;;  %v990_v2 = vmov 839922192   ;;  %v330_v4 = vlaneseq  ;;  %v321_v9 = vld [vmem:[%s260_s28] sm:$0xff] }
  0x3a   : > { %872 = vset.pattern.permute.xlu0 %v989_v0  ;;  %873 = vset.pattern.permute.xlu1 %v989_v0  ;;  %v328_v3 = vunpack.c.l.s4 %v990_v2  ;;  %s991_s30 = smov 1   ;;  %s992_s11 = smov 16   ;;  %v999_v13 = vmov 0.0   ;;  %v1171_v17 = vld [vmem:[%s1289_s4] sm:$0xff]  ;;  %v1176_v18 = vld [vmem:[%s1289_s4 + $0x8] sm:$0xff]  ;;  %vm538_vm8 = vcmask 1043456  }
  0x3b   : > { %s1152_s14 = scalar_select %p302_p9, %s978_s21, 1  ;;  %v1158_v6 = vshrl.u32 %v330_v4, 7  ;;  %609 = vmatprep.mubr.f32.mxu0 %v999_v13  ;;  %v1165_v15 = vand.u32 127, %v330_v4  ;;  %vm534_vm9 = vcmask 293888  }
  0x3c   : > { %v329_v5 = vunpack.c.0.s8 %v328_v3  ;;  %s993_s9 = smov 17   ;;  %s994_s12 = smov 15  }
  0x3d   : > { %s777_s16 = sshll.u32 %s1152_s14, 2  ;;  %s995_s13 = smov 127   ;;  %v417_v16 = vsub.s32 3, %v1158_v6  ;;  %vm412_vm0 = vcmp.lt.s32.totalorder %v1165_v15, 1  ;;  %v354_v23 = vsub.s32 0, %v1158_v6  ;;  %vm349_vm1 = vcmp.lt.s32.totalorder %v1165_v15, 17 }
  0x3e   : > { %s305_s10 = scalar_lea.vmem %s1285_s0, %s777_s16  ;;  %v332_v7 = vsub.s32 %v329_v5, %v1158_v6  ;;  %s996_s15 = smov 112   ;;  %v398_v28 = vsub.s32 2, %v1158_v6  ;;  %v444_v37 = vsub.s32 5, %v1158_v6  ;;  %vm393_vm2 = vcmp.lt.s32.totalorder %v1165_v15, 15 }
  0x3f   : > { %v322_v1 = vld [vmem:[%s305_s10] sm:$0xf]  ;;  %s997_s27 = smov 113   ;;  %s998_s29 = smov 111   ;;  %v418_v21 = vrot.slane %v1171_v17, %v417_v16  ;;  %v422_v22 = vrot.slane %v1176_v18, %v417_v16  ;;  %v355_v31 = vrot.slane %v1171_v17, %v354_v23  ;;  %v359_v32 = vrot.slane %v1176_v18, %v354_v23 }
  0x40   : > { %325 = vperm.xlu0 %872, %v322_v1   ;;  %s778_s28 = sshll.u32 %s1152_s14, 3  ;;  %v399_v40 = vrot.slane %v1171_v17, %v398_v28  ;;  %v403_v43 = vrot.slane %v1176_v18, %v398_v28  ;;  %v373_v44 = vsub.s32 1, %v1158_v6  ;;  %vm439_vm3 = vcmp.lt.s32.totalorder %v1165_v15, 127  ;;  %v779_v28 = vld [vmem:[%s1289_s4 + $0x10] ss:$0 sm:$0xff]  ;;  %s790_s16 = sshll.u32 %s978_s21, 8 }
  0x41   : > { %s312_s24 = scalar_lea.vmem %s1286_s1, %s778_s28  ;;  %v445_v47 = vrot.slane %v1171_v17, %v444_v37  ;;  %v488_v48 = vsub.s32 7, %v1158_v6  ;;  %v449_v51 = vrot.slane %v1176_v18, %v444_v37  ;;  %vm368_vm4 = vcmp.lt.s32.totalorder %v1165_v15, 16  ;;  %s776_s28 = sshll.u32 %s1142_s25, 4 }
  0x42   : > { %v616_v14 = vld [vmem:[%s312_s24] sm:$0xff]  ;;  %v374_v54 = vrot.slane %v1171_v17, %v373_v44  ;;  %v378_v55 = vrot.slane %v1176_v18, %v373_v44  ;;  %vm483_vm5 = vcmp.lt.s32.totalorder %v1165_v15, 112  ;;  %v469_v60 = vsub.s32 6, %v1158_v6  ;;  %s301_s17 = scalar_lea.vmem [#allocation6], %s776_s28  ;;  %p1299_p11 = scmp.ne.s32.totalorder %s1294_s6, 0 }
  0x43   : > { %v489_v58 = vrot.slane %v1171_v17, %v488_v48  ;;  %v493_v59 = vrot.slane %v1176_v18, %v488_v48  ;;  %vm464_vm6 = vcmp.lt.s32.totalorder %v1165_v15, 113  ;;  %vm508_vm7 = vcmp.lt.s32.totalorder %v1165_v15, 111  ;;  %s643_s24 = sshll.u32 %s301_s17, 4  ;;  %s1000_s14 = smov [#allocation6]   ;;  %s1238_s24 = int_to_ptr.vmem [resolvable:$true] %s643_s24 }
  0x44   : > { %v470_v16 = vrot.slane %v1171_v17, %v469_v60  ;;  %v780_v17 = vld [vmem:[%s1289_s4 + $0x18] ss:$0 sm:$0xff]  ;;  %s904_s21 = scalar_lea.vmem %s1238_s24, 256 }
  0x45   : > { %p905_p8 = scmp.ne.s32.totalorder %s1238_s24, %s904_s21 }
  0x47   : > { %p906_p0 = pnand %p905_p8, %p1299_p11 }
  0x49   : > { %p907_p7 = pneg %p906_p0 }
  0xbf   : > { %v326_v8 = vpop.permute.xlu0 %325 }
  0xc0   : > { %v333_v10 = vrot.slane %v326_v8, %v332_v7 }
  0xc2   : > { %v335_v11 = vmul.f32 %v333_v10, %v321_v9 }
  0xc4   : > { %433 = vst [vmem:[#allocation2 + $0x20] sm:$0xf] %v335_v11  ;;  %408 = vrot.lane.b32.xlu1 %v335_v11, %s991_s30  ;;  %364 = vrot.lane.b32.xlu0 %v335_v11, %s992_s11  ;;  %v341_v12 = vcombine.high %v335_v11, %v335_v11 }
  0xc6   : > { %434 = vst [vmem:[#allocation2 + $0x28] sm:$0xf] %v341_v12 }
  0xc8   : > { %343 = vrot.lane.b32.xlu1 %v335_v11, %s993_s9  ;;  %410 = vrot.lane.b32.xlu0 %v341_v12, %s991_s30 }
  0xcc   : > { %389 = vrot.lane.b32.xlu1 %v335_v11, %s994_s12  ;;  %345 = vrot.lane.b32.xlu0 %v341_v12, %s993_s9  ;;  %s627_s9 = scalar_lea.sflag [#allocation5], %s1142_s25 }
  0xd0   : > { %435 = vrot.lane.b32.xlu1 %v335_v11, %s995_s13  ;;  %391 = vrot.lane.b32.xlu0 %v341_v12, %s994_s12  ;;  %s908_s12 = sshll.u32 %s1000_s14, 4  ;;  %s909_s12 = int_to_ptr.vmem [resolvable:$false] %s908_s12 }
  0xd1   : > { %p911_p13 = scmp.lt.s32.totalorder %s1238_s24, %s909_s12 }
  0xd4   : > { %437 = vrot.lane.b32.xlu0 %v341_v12, %s995_s13  ;;  %366 = vrot.lane.b32.xlu1 %v341_v12, %s992_s11  ;;  %s1236_s11 = scalar_lea.hbm %s1290_s5, %s790_s16  ;;  %s910_s13 = scalar_lea.vmem %s909_s12, 512 }
  0xd5   : > { %p912_p3 = scmp.lt.s32.totalorder %s910_s13, %s904_s21 }
  0xd7   : > { %p913_p6 = por %p912_p3, %p911_p13 }
  0xd8   : > { %481 = vrot.lane.b32.xlu0 %v341_v12, %s996_s15  ;;  %479 = vrot.lane.b32.xlu1 %v335_v11, %s996_s15 }
  0xd9   : > { %p914_p4 = pnand %p913_p6, %p907_p7 }
  0xdc   : > { %462 = vrot.lane.b32.xlu0 %v341_v12, %s997_s27  ;;  %460 = vrot.lane.b32.xlu1 %v335_v11, %s997_s27 }
  0xe0   : > { %506 = vrot.lane.b32.xlu0 %v341_v12, %s998_s29  ;;  %504 = vrot.lane.b32.xlu1 %v335_v11, %s998_s29 }
  0xe4   : > { %619 = vperm.xlu1 %873, %v616_v14  }
 0x136   : > { %v409_v19 = vpop.permute.xlu1 %408  ;;  %v365_v20 = vpop.permute.xlu0 %364 }
 0x13a   : > { %v344_v24 = vpop.permute.xlu1 %343  ;;  %v411_v25 = vpop.permute.xlu0 %410 }
 0x13b   : > { %v413_v26 = vsel %vm412_vm0, %v409_v19, %v411_v25  ;;  %v414_v27 = vsel %vm412_vm0, %v411_v25, %v409_v19  ;;  %v474_v19 = vrot.slane %v1176_v18, %v469_v60 }
 0x13c   : > { %v423_v29 = vmul.f32 %v418_v21, %v414_v27  ;;  %v424_v30 = vmul.f32 %v422_v22, %v413_v26 }
 0x13e   : > { %v427_v33 = vrot.slane %v423_v29, 4  ;;  %v428_v34 = vrot.slane %v424_v30, 4  ;;  %v390_v35 = vpop.permute.xlu1 %389  ;;  %v346_v36 = vpop.permute.xlu0 %345 }
 0x13f   : > { %v350_v38 = vsel %vm349_vm1, %v344_v24, %v346_v36  ;;  %v351_v39 = vsel %vm349_vm1, %v346_v36, %v344_v24 }
 0x140   : > { %431 = vst [vmem:[#allocation2 + $0x10] sm:$0xf0] %v427_v33  ;;  %432 = vst [vmem:[#allocation2 + $0x18] sm:$0xf0] %v428_v34  ;;  %v360_v41 = vmul.f32 %v355_v31, %v351_v39  ;;  %v361_v42 = vmul.f32 %v359_v32, %v350_v38 }
 0x142   : > { %362 = vst [vmem:[#allocation2] sm:$0xf] %v360_v41  ;;  %363 = vst [vmem:[#allocation2 + $0x8] sm:$0xf] %v361_v42  ;;  %v436_v45 = vpop.permute.xlu1 %435  ;;  %v392_v46 = vpop.permute.xlu0 %391 }
 0x143   : > { %v394_v49 = vsel %vm393_vm2, %v390_v35, %v392_v46  ;;  %v395_v50 = vsel %vm393_vm2, %v392_v46, %v390_v35  ;;  %v523_v46 = vld [vmem:[%s1288_s3] sm:$0xff] }
 0x144   : > { %v404_v52 = vmul.f32 %v399_v40, %v395_v50  ;;  %v405_v53 = vmul.f32 %v403_v43, %v394_v49 }
 0x146   : > { %406 = vst [vmem:[#allocation2 + $0x10] sm:$0xf] %v404_v52  ;;  %407 = vst [vmem:[#allocation2 + $0x18] sm:$0xf] %v405_v53  ;;  %v438_v56 = vpop.permute.xlu0 %437  ;;  %v367_v57 = vpop.permute.xlu1 %366 }
 0x147   : > { %v440_v61 = vsel %vm439_vm3, %v436_v45, %v438_v56  ;;  %v441_v62 = vsel %vm439_vm3, %v438_v56, %v436_v45  ;;  %v369_v63 = vsel %vm368_vm4, %v365_v20, %v367_v57  ;;  %v370_v0 = vsel %vm368_vm4, %v367_v57, %v365_v20 }
 0x148   : > { %v450_v1 = vmul.f32 %v445_v47, %v440_v61  ;;  %v451_v2 = vmul.f32 %v449_v51, %v441_v62  ;;  %v379_v3 = vmul.f32 %v374_v54, %v370_v0  ;;  %v380_v4 = vmul.f32 %v378_v55, %v369_v63 }
 0x14a   : > { %v454_v5 = vrot.slane %v450_v1, 4  ;;  %v455_v7 = vrot.slane %v451_v2, 4  ;;  %v383_v8 = vrot.slane %v379_v3, 4  ;;  %v384_v6 = vrot.slane %v380_v4, 4  ;;  %v482_v9 = vpop.permute.xlu0 %481  ;;  %v480_v10 = vpop.permute.xlu1 %479 }
 0x14b   : > { %v484_v11 = vsel %vm483_vm5, %v480_v10, %v482_v9  ;;  %v485_v12 = vsel %vm483_vm5, %v482_v9, %v480_v10 }
 0x14c   : > { %458 = vst [vmem:[#allocation2 + $0x20] sm:$0xf0] %v454_v5  ;;  %459 = vst [vmem:[#allocation2 + $0x28] sm:$0xf0] %v455_v7  ;;  %v494_v13 = vmul.f32 %v489_v58, %v484_v11  ;;  %v495_v14 = vmul.f32 %v493_v59, %v485_v12 }
 0x14d   : > { %387 = vst [vmem:[#allocation2] sm:$0xf0] %v383_v8  ;;  %388 = vst [vmem:[#allocation2 + $0x8] sm:$0xf0] %v384_v6  ;;  %v527_v30 = vld [vmem:[#allocation2 + $0x18] sm:$0xff]  ;;  %v526_v35 = vld [vmem:[#allocation2 + $0x10] sm:$0xff] }
 0x14e   : > { %v498_v20 = vrot.slane %v494_v13, 4  ;;  %v499_v21 = vrot.slane %v495_v14, 4  ;;  %v463_v22 = vpop.permute.xlu0 %462  ;;  %v461_v23 = vpop.permute.xlu1 %460 }
 0x14f   : > { %v465_v24 = vsel %vm464_vm6, %v461_v23, %v463_v22  ;;  %v466_v25 = vsel %vm464_vm6, %v463_v22, %v461_v23 }
 0x150   : > { %502 = vst [vmem:[#allocation2 + $0x30] sm:$0xf0] %v498_v20  ;;  %503 = vst [vmem:[#allocation2 + $0x38] sm:$0xf0] %v499_v21  ;;  %v475_v26 = vmul.f32 %v470_v16, %v465_v24  ;;  %v476_v27 = vmul.f32 %v474_v19, %v466_v25 }
 0x152   : > { %477 = vst [vmem:[#allocation2 + $0x30] sm:$0xf] %v475_v26  ;;  %478 = vst [vmem:[#allocation2 + $0x38] sm:$0xf] %v476_v27  ;;  %v507_v18 = vpop.permute.xlu0 %506  ;;  %v505_v29 = vpop.permute.xlu1 %504 }
 0x153   : > { %v509_v31 = vsel %vm508_vm7, %v505_v29, %v507_v18  ;;  %v510_v32 = vsel %vm508_vm7, %v507_v18, %v505_v29  ;;  %v529_v39 = vld [vmem:[#allocation2 + $0x28] sm:$0xff]  ;;  %v528_v41 = vld [vmem:[#allocation2 + $0x20] sm:$0xff] }
 0x154   : > { %v525_v33 = vld [vmem:[#allocation2 + $0x8] sm:$0xff]  ;;  %v524_v34 = vld [vmem:[#allocation2] sm:$0xff]  ;;  %v519_v36 = vmul.f32 %v779_v28, %v509_v31  ;;  %v520_v15 = vmul.f32 %v780_v17, %v510_v32 }
 0x155   : > { %v791_v37 = vpack.c.bf16 %v527_v30, %v525_v33  ;;  %v793_v38 = vpack.c.bf16 %v526_v35, %v524_v34 }
 0x156   : > { %521 = vst [vmem:[#allocation2 + $0x40] sm:$0xf] %v519_v36  ;;  %522 = vst [vmem:[#allocation2 + $0x48] sm:$0xf] %v520_v15 }
 0x157   : > { %792 = vmatprep.subr.bf16.mxu0 %v791_v37 }
 0x158   : > { %794 = vmatpush1.bf16.msra.mxu0 %v793_v38 }
 0x159   : > { %v531_v40 = vld [vmem:[#allocation2 + $0x38] sm:$0xff]  ;;  %v530_v42 = vld [vmem:[#allocation2 + $0x30] sm:$0xff] }
 0x15a   : > { %v795_v43 = vpack.c.bf16 %v531_v40, %v529_v39  ;;  %v797_v44 = vpack.c.bf16 %v530_v42, %v528_v41 }
 0x15c   : > { %796 = vmatprep.subr.bf16.mxu0 %v795_v43 }
 0x15d   : > { %798 = vmatpush1.bf16.msra.mxu0 %v797_v44  ;;  %v533_v45 = vld [vmem:[#allocation2 + $0x48] sm:$0xf]  ;;  %v532_v47 = vld [vmem:[#allocation2 + $0x40] sm:$0xf] }
 0x15e   : > { %781 = vmatprep.subr.msk.mxu0 %vm538_vm8, %v533_v45 }
 0x161   : > { %782 = vmatpush1.msk.msra.mxu0 %vm538_vm8, %v532_v47 }
 0x162   : > { %783 = vmatmul.mubr.msk.f32.vlgmr.msra.gmra.mrb[0].mxu0 %vm534_vm9, %v523_v46 }
 0x163   : > { %v620_v48 = vpop.permute.xlu1 %619 }
 0x235   : > { %v611_v49 = vpop.f32.mrb[0].mxu0 }
 0x236   : > { %v622_v50 = vmul.f32 %v620_v48, %v611_v49  ;;  %v613_v51 = vpop.f32.mrb[1].mxu0 }
 0x237   : > { %v623_v52 = vmul.f32 %v620_v48, %v613_v51 }
 0x238   : > { %624 = vst [vmem:[%s301_s17] sm:$0xff] %v622_v50 }
 0x239   : > { %625 = vst [vmem:[%s301_s17 + $0x8] sm:$0xff] %v623_v52 }
 0x23a   : > { %917 = shalt.err (!%p914_p4)
}
 0x23b   : > { %s918_s25 = scalar_lea.hbm %s1236_s11, 256  ;;  %s922_s29 = scalar_lea.hbm %s1290_s5, 512 }
 0x23c   : > { %p919_p10 = scmp.ne.s32.totalorder %s1236_s11, %s918_s25  ;;  %p923_p2 = scmp.lt.u32.totalorder %s1236_s11, %s1290_s5 }
 0x23d   : > { %p924_p5 = scmp.lt.u32.totalorder %s922_s29, %s918_s25  ;;  %p926_p8 = scmp.lt.u32.totalorder %s918_s25, %s1236_s11 }
 0x23e   : > { %p920_p12 = pnand %p919_p10, %p1299_p11 }
 0x23f   : > { %p925_p9 = por %p924_p5, %p923_p2 }
 0x240   : > { %p921_p1 = pneg %p920_p12 }
 0x241   : > { %p927_p0 = por %p926_p8, %p925_p9 }
 0x243   : > { %p928_p7 = pnand %p927_p0, %p921_p1 }
 0x245   : > { %931 = shalt.err (!%p928_p7)
}
 0x246   : > { %801 = dma.vmem_to_hbm [thread:$0]  (%p1299_p11), %s1238_s24, 256, %s1236_s11, %s627_s9  }
 0x247 PF: > { %s655_s17 = sand.u32 1, %s966_s18   ;;  %p1300_p13 = scmp.ne.s32.totalorder %s1295_s8, 0 }
 0x248   : > { %p1301_p3 = scmp.ge.s32.totalorder %s986_s23, 2  ;;  %s656_s10 = scalar_lea.sflag [#allocation5], %s655_s17 }
 0x24a   : > { %p808_p6 = pnand %p1301_p3, %p1300_p13 }
 0x24c   : > { %961 = dma.done.wait (!%p808_p6), %s656_s10, 256  }
 0x24d   : > { %963 = vsyncadd (!%p808_p6), %s656_s10, 4294967040  ;;  %s21_s23 = sadd.s32 1, %s986_s23   ;;  %s1302_s18 = smov %s970_s19 }
 0x24e   : > { %p18_p4 = scmp.ge.s32.totalorder %s21_s23, 4   ;;  %s1303_s19 = smov %s974_s20 }
 0x24f   : > { %s1304_s20 = smov %s1087_s7  ;;  %s1305_s21 = smov %s982_s22 }
 0x250   : > { %s1306_s22 = smov %s1308_s26  ;;  %20 = sbr.rel (!%p18_p4) target bundleno = 6 (0x6), region = 98 }
 0x257   :  { %661 = vsyncpa [#allocation4], 1 }
 0x258   :  { %663 = vsyncpa [#allocation4 + $0x1], 1 }
 0x259   :  { %664 = vsyncpa [#allocation5], 1 }
 0x25a   :  { %666 = vsyncpa [#allocation5 + $0x1], 1 }

</bundles_post_ra>
